<compile_context>
chip_gen: v6e
topology: v6e:2x2x1
jax: 0.10.0
libtpu: 0.0.40
codegen_flags: <defaults>
</compile_context>

<pallas_src>
import math

import jax
import jax.numpy as jnp
from jax.experimental import pallas as pl
from jax.experimental.pallas import tpu as pltpu


_LANE = 128
_TILE = 1024                      # preferred tile edge for lane-constrained dims (mult. of 128)
_SPLIT_BYTES = 2 * 1024 * 1024    # arrays bigger than this get >=2 grid blocks (2 TCs on v7x)


def _cdiv(a, b):
    return -(-a // b)


def _round_up(v, m):
    return _cdiv(v, m) * m


def _sublane_pack(dtype):
    """Native packed sublane tile: 8 for 4-byte, 16 for 2-byte, 32 for 1-byte dtypes."""
    return max(8, 32 // max(1, jnp.dtype(dtype).itemsize))


_VMEM_CFG_CACHE = None


def _vmem_config():
    """(vmem_limit_bytes, per-block soft budget) -- generation aware."""
    global _VMEM_CFG_CACHE
    if _VMEM_CFG_CACHE is not None:
        return _VMEM_CFG_CACHE
    phys = None
    try:
        info = pltpu.get_tpu_info()
        for name in ("vmem_capacity_bytes", "vmem_size_bytes", "vmem_bytes"):
            v = getattr(info, name, None)
            if isinstance(v, int) and v > 0:
                phys = v
                break
    except Exception:
        phys = None
    if phys is None:
        cfg = (32 * 1024 * 1024, 8 * 1024 * 1024)        # conservative fallback
    elif phys <= 64 * 1024 * 1024:                       # v7x-class: 64 MiB per core
        cfg = (48 * 1024 * 1024, 10 * 1024 * 1024)
    else:                                                # v5e / v6e: 128 MiB
        cfg = (64 * 1024 * 1024, 14 * 1024 * 1024)
    _VMEM_CFG_CACHE = cfg
    return cfg


def _edge_tile(d):
    """Tile for a lane-constrained dim: full dim if it fits, else _TILE (mult. of 128)."""
    return d if d <= _TILE else _TILE


def _lane_tile_cands(d):
    """Legal tile candidates (largest first) for a lane-constrained dim."""
    c = [d] if d <= _TILE else [_TILE]
    c += [t for t in (512, 256, 128) if t < c[0]]
    return c


def _shrink_lane_tile(t):
    """Next smaller legal (multiple-of-128) tile, or t if it cannot shrink."""
    if t <= _LANE:
        return t
    nt = _round_up(_cdiv(t, 2), _LANE)
    return nt if nt < t else t


def _cost(x):
    # Pure bandwidth op: read everything once, write everything once.
    return pl.CostEstimate(flops=0, transcendentals=0,
                           bytes_accessed=2 * x.size * x.dtype.itemsize)


# ---------------------------------------------------------------------------
# Kernels
# ---------------------------------------------------------------------------

def _kernel_swap2d(x_ref, o_ref):
    """(ba, tm, tn) -> (ba, tn, tm): one batched minor-dims transpose (XLU)."""
    if x_ref.shape[0] == 1:
        o_ref[0] = x_ref[0].T
    else:
        o_ref[...] = jnp.swapaxes(x_ref[...], 1, 2)


def _kernel_swap2d_midb(x_ref, o_ref):
    """(ba, tm, tb, tn) -> (ba, tn, tb, tm).  tb <= 32 so this is a short static
    unroll of batched minor-dims transposes (no per-(ba*B) dynamic loop)."""
    for b in range(x_ref.shape[2]):
        o_ref[:, :, b, :] = jnp.swapaxes(x_ref[:, :, b, :], 1, 2)


def _kernel_fold_mc(x_ref, o_ref):
    """(ba, tm, tn, C) -> (ba, tn, tm*C).  The output view folds M and C
    (adjacent in the transposed layout) so the output VMEM block and its HBM
    write-back are lane-dense.  tm is capped at 128 by the wrapper, so this
    static loop (constant lane offsets) stays small."""
    tm = x_ref.shape[1]
    C = x_ref.shape[3]
    for m in range(tm):
        o_ref[:, :, m * C:(m + 1) * C] = x_ref[:, m, :, :]


def _kernel_general(x_ref, o_ref):
    """(1, tm, 1, tn, tc) -> (1, tn, 1, tm, tc).  Safe fallback for B > 1 with
    C > 1, or B == 1 with C >= 128 (lane dim already dense)."""
    tm = x_ref.shape[1]
    for m in range(tm):
        o_ref[0, :, 0, m, :] = x_ref[0, m, 0, :, :]


# ---------------------------------------------------------------------------
# Wrapper
# ---------------------------------------------------------------------------

def transpose_pallas(x, dim1, dim2):
    """Pallas TPU equivalent of torch.Tensor.transpose(dim1, dim2)."""
    nd = x.ndim
    d1, d2 = sorted((dim1 % nd, dim2 % nd))
    if d1 == d2:
        return x

    shape = x.shape
    out_shape = list(shape)
    out_shape[d1], out_shape[d2] = out_shape[d2], out_shape[d1]
    out_shape = tuple(out_shape)

    if x.size == 0:
        return jnp.swapaxes(x, d1, d2)

    A = math.prod(shape[:d1])
    M = shape[d1]
    B = math.prod(shape[d1 + 1:d2])
    N = shape[d2]
    C = math.prod(shape[d2 + 1:])
    isz = x.dtype.itemsize
    sub = _sublane_pack(x.dtype)
    vmem_limit, budget = _vmem_config()
    cost = _cost(x)
    total_bytes = x.size * isz

    def _params(n_axes):
        return pltpu.CompilerParams(
            dimension_semantics=("parallel",) * n_axes,
            vmem_limit_bytes=vmem_limit)

    # Swapping a size-1 axis in these configurations is a pure (free) reshape.
    if (M == 1 and N == 1) or (B == 1 and (M == 1 or N == 1)):
        return x.reshape(out_shape)

    if C == 1 and B == 1:
        # -------- lane-dense tiled 2-D transpose: (A, M, N) -> (A, N, M) --------
        tm = _edge_tile(M)
        tn = _edge_tile(N)

        def slab2d(tm_, tn_):
            return (_round_up(tm_, sub) * _round_up(tn_, _LANE)
                    + _round_up(tn_, sub) * _round_up(tm_, _LANE)) * isz

        while slab2d(tm, tn) > budget:
            if tn >= tm:
                nt = _shrink_lane_tile(tn)
                if nt < tn:
                    tn = nt
                    continue
            nm = _shrink_lane_tile(tm)
            if nm < tm:
                tm = nm
                continue
            nt = _shrink_lane_tile(tn)
            if nt < tn:
                tn = nt
                continue
            break

        ba = max(1, min(A, 256, budget // max(1, slab2d(tm, tn))))
        # Keep >= 2 grid blocks alive so both TensorCores (v7x) get work.
        if (_cdiv(A, ba) * _cdiv(M, tm) * _cdiv(N, tn) == 1
                and total_bytes > _SPLIT_BYTES):
            if M >= N and M > _LANE:
                tm = _round_up(_cdiv(M, 2), _LANE)
            elif N > _LANE:
                tn = _round_up(_cdiv(N, 2), _LANE)
            elif A >= 2:
                ba = _cdiv(A, 2)
        grid = (_cdiv(A, ba), _cdiv(M, tm), _cdiv(N, tn))
        out = pl.pallas_call(
            _kernel_swap2d,
            out_shape=jax.ShapeDtypeStruct((A, N, M), x.dtype),
            grid=grid,
            in_specs=[pl.BlockSpec((ba, tm, tn), lambda a, i, j: (a, i, j))],
            out_specs=pl.BlockSpec((ba, tn, tm), lambda a, i, j: (a, j, i)),
            compiler_params=_params(3),
            cost_estimate=cost,
        )(x.reshape(A, M, N))
        return out.reshape(out_shape)

    if C == 1:
        # -------- B > 1, last axis swapped: (A, M, B, N) -> (A, N, B, M) --------
        # B is tiled on the grid (tb = full B or a multiple of 8), so this path
        # handles arbitrarily large B and never falls into the general path.
        tb = B if B <= sub else sub
        tbp = _round_up(tb, sub)
        picked = None
        for tm in _lane_tile_cands(M):
            for tn in _lane_tile_cands(N):
                slab = (tm * tbp * _round_up(tn, _LANE)
                        + tn * tbp * _round_up(tm, _LANE)) * isz
                if slab <= budget:
                    picked = (tm, tn, slab)
                    break
            if picked is not None:
                break
        if picked is None:          # unreachable for normal dtypes; keep a safe floor
            tm = M if M <= _LANE else _LANE
            tn = N if N <= _LANE else _LANE
            slab = (tm * tbp * _round_up(tn, _LANE)
                    + tn * tbp * _round_up(tm, _LANE)) * isz
        else:
            tm, tn, slab = picked
        ba = max(1, min(A, 256, budget // max(1, slab)))
        grid = (_cdiv(A, ba), _cdiv(B, tb), _cdiv(M, tm), _cdiv(N, tn))
        out = pl.pallas_call(
            _kernel_swap2d_midb,
            out_shape=jax.ShapeDtypeStruct((A, N, B, M), x.dtype),
            grid=grid,
            in_specs=[pl.BlockSpec((ba, tm, tb, tn),
                                   lambda a, b, i, j: (a, i, b, j))],
            out_specs=pl.BlockSpec((ba, tn, tb, tm),
                                   lambda a, b, i, j: (a, j, b, i)),
            compiler_params=_params(4),
            cost_estimate=cost,
        )(x.reshape(A, M, B, N))
        return out.reshape(out_shape)

    if B == 1 and C < _LANE:
        # -------- fold M*C so the output block is lane-dense:
        #          (A, M, N, C) -> (A, N, M*C) --------
        tm = M if M <= _LANE else _LANE            # 128*C stays a multiple of 128
        lane_pad = _round_up(C, _LANE)
        per_row_in = tm * lane_pad * isz
        max_tn = max(sub, ((budget // 2) // max(1, per_row_in)) // sub * sub)
        tn = N if N <= max_tn else min(_TILE, max_tn)
        slab = (tm * _round_up(tn, sub) * lane_pad
                + _round_up(tn, sub) * _round_up(tm * C, _LANE)) * isz
        ba = max(1, min(A, 256, budget // max(1, slab)))
        if (_cdiv(A, ba) * _cdiv(M, tm) * _cdiv(N, tn) == 1
                and total_bytes > _SPLIT_BYTES):
            if A >= 2:
                ba = _cdiv(A, 2)
            elif N > sub:
                tn = max(sub, _round_up(_cdiv(N, 2), sub))
        grid = (_cdiv(A, ba), _cdiv(M, tm), _cdiv(N, tn))
        # TODO(synk): a lane-dense input block (ba, tm, tn*C) with an in-kernel
        # (tn, C) regroup plus 128//C-wide grouped stores would remove the 128/C
        # load-side VMEM/DMA inflation and the C-lane masked vst (worst on v5e);
        # the proven per-m masked-store form is kept here for lowering safety.
        out = pl.pallas_call(
            _kernel_fold_mc,
            out_shape=jax.ShapeDtypeStruct((A, N, M * C), x.dtype),
            grid=grid,
            in_specs=[pl.BlockSpec((ba, tm, tn, C), lambda a, i, j: (a, i, j, 0))],
            out_specs=pl.BlockSpec((ba, tn, tm * C), lambda a, i, j: (a, j, i)),
            compiler_params=_params(3),
            cost_estimate=cost,
        )(x.reshape(A, M, N, C))
        return out.reshape(out_shape)

    # -------- general fallback: 5-D views, tiled slab copies --------
    # Reached only for B > 1 with C > 1, or B == 1 with C >= 128.
    tc = C if C <= _TILE else _TILE
    tm = M if M <= _LANE else _LANE
    tn = N if N <= _TILE else _TILE

    def _gbytes(tm_, tn_, tc_):
        lane = _round_up(tc_, _LANE)
        return (tm_ * _round_up(tn_, sub) * lane
                + tn_ * _round_up(tm_, sub) * lane) * isz

    while _gbytes(tm, tn, tc) > budget:
        if tn > sub and tn % (2 * sub) == 0:
            tn //= 2
        elif tm > sub and tm % (2 * sub) == 0:
            tm //= 2
        elif tc > _LANE and tc % (2 * _LANE) == 0:
            tc //= 2
        else:
            break                                   # rely on the scoped-VMEM headroom

    grid = (A, B, _cdiv(M, tm), _cdiv(N, tn), _cdiv(C, tc))
    # TODO(synk): for C < 128 this path still pads the lane dim and stores one
    # sublane (m) at a time; reusing the M*C output fold here would remove both,
    # but the B > 1 & C > 1 case is rare enough to keep the proven simple form.
    out = pl.pallas_call(
        _kernel_general,
        out_shape=jax.ShapeDtypeStruct((A, N, B, M, C), x.dtype),
        grid=grid,
        in_specs=[pl.BlockSpec((1, tm, 1, tn, tc),
                               lambda a, b, i, j, k: (a, i, b, j, k))],
        out_specs=pl.BlockSpec((1, tn, 1, tm, tc),
                               lambda a, b, i, j, k: (a, j, b, i, k)),
        compiler_params=_params(5),
        cost_estimate=cost,
    )(x.reshape(A, M, B, N, C))
    return out.reshape(out_shape)


class Transpose:
    """JAX/Pallas counterpart of the PyTorch Transpose(dim1, dim2) module."""

    def __init__(self, dim1, dim2):
        self.dim1 = dim1
        self.dim2 = dim2

    def __call__(self, x):
        return transpose_pallas(x, self.dim1, self.dim2)


if __name__ == "__main__":
    root = jax.random.PRNGKey(0)

    cases = [
        ((2, 4, 16, 16), 1, 2),     # NCHW Transpose(1, 2) -> fold_mc path (the module instance)
        ((2, 4, 16, 16), -2, -1),   # last-two-axes swap   -> lane-dense 2-D path (batched block)
        ((2, 6, 3, 10), 1, 3),      # middle dim kept       -> midb path, tb = full B
        ((2, 4, 20, 8), 1, 3),      # larger B              -> midb path, ragged B grid
        ((2, 3, 4, 5, 6), 1, 3),    # B > 1 and C > 1       -> general 5-D fallback
        ((1100, 230), 0, 1),        # ragged M tiles        -> 2-D path, cdiv grid
        ((1, 1024, 640), 1, 2),     # one-block array       -> 2-D path, split for 2 cores
    ]
    for idx, (shp, d1, d2) in enumerate(cases):
        k = jax.random.fold_in(root, idx)
        x = jax.random.normal(k, shp, dtype=jnp.float32)
        out = jax.block_until_ready(Transpose(d1, d2)(x))
        ref = jnp.swapaxes(x, d1, d2)
        assert out.shape == ref.shape and out.dtype == ref.dtype, (shp, d1, d2)
        assert bool(jnp.array_equal(out, ref)), f"mismatch vs jnp.swapaxes for {shp} T({d1},{d2})"

    print("KERNEL_OK")
</pallas_src>

<mosaic_0001>
module attributes {stable_mosaic.version = 11 : i64} {
  func.func @_kernel_fold_mc(%arg0: i32, %arg1: i32, %arg2: i32, %arg3: memref<2x4x16x16xf32, #tpu.memory_space<vmem>>, %arg4: memref<2x16x64xf32, #tpu.memory_space<vmem>>) attributes {dimension_semantics = [#tpu.dimension_semantics<parallel>, #tpu.dimension_semantics<parallel>, #tpu.dimension_semantics<parallel>], iteration_bounds = array<i64: 1, 1, 1>, scalar_prefetch = 0 : i64, scratch_operands = 0 : i64, tpu.core_type = #tpu.core_type<tc>, window_params = [{transform_indices = @transform_0, window_bounds = array<i64: 2, 4, 16, 16>}, {transform_indices = @transform_1, window_bounds = array<i64: 2, 16, 64>}]} {
    %c0 = arith.constant 0 : index
    %c0_0 = arith.constant 0 : index
    %c0_1 = arith.constant 0 : index
    %c0_2 = arith.constant 0 : index
    %0 = vector.load %arg3[%c0, %c0_0, %c0_1, %c0_2] : memref<2x4x16x16xf32, #tpu.memory_space<vmem>>, vector<2x1x16x16xf32>
    %1 = vector.shape_cast %0 : vector<2x1x16x16xf32> to vector<2x16x16xf32>
    %c0_3 = arith.constant 0 : index
    %c0_4 = arith.constant 0 : index
    %c0_5 = arith.constant 0 : index
    %2 = vector.load %arg4[%c0_3, %c0_4, %c0_5] : memref<2x16x64xf32, #tpu.memory_space<vmem>>, vector<2x16x16xf32>
    tpu.vector_store %arg4[%c0_3, %c0_4, %c0_5], %1 {strides = array<i32>} : memref<2x16x64xf32, #tpu.memory_space<vmem>>, vector<2x16x16xf32>,
    %c0_6 = arith.constant 0 : index
    %c1 = arith.constant 1 : index
    %c0_7 = arith.constant 0 : index
    %c0_8 = arith.constant 0 : index
    %3 = vector.load %arg3[%c0_6, %c1, %c0_7, %c0_8] : memref<2x4x16x16xf32, #tpu.memory_space<vmem>>, vector<2x1x16x16xf32>
    %4 = vector.shape_cast %3 : vector<2x1x16x16xf32> to vector<2x16x16xf32>
    %c0_9 = arith.constant 0 : index
    %c0_10 = arith.constant 0 : index
    %c16 = arith.constant 16 : index
    %5 = vector.load %arg4[%c0_9, %c0_10, %c16] : memref<2x16x64xf32, #tpu.memory_space<vmem>>, vector<2x16x16xf32>
    tpu.vector_store %arg4[%c0_9, %c0_10, %c16], %4 {strides = array<i32>} : memref<2x16x64xf32, #tpu.memory_space<vmem>>, vector<2x16x16xf32>,
    %c0_11 = arith.constant 0 : index
    %c2 = arith.constant 2 : index
    %c0_12 = arith.constant 0 : index
    %c0_13 = arith.constant 0 : index
    %6 = vector.load %arg3[%c0_11, %c2, %c0_12, %c0_13] : memref<2x4x16x16xf32, #tpu.memory_space<vmem>>, vector<2x1x16x16xf32>
    %7 = vector.shape_cast %6 : vector<2x1x16x16xf32> to vector<2x16x16xf32>
    %c0_14 = arith.constant 0 : index
    %c0_15 = arith.constant 0 : index
    %c32 = arith.constant 32 : index
    %8 = vector.load %arg4[%c0_14, %c0_15, %c32] : memref<2x16x64xf32, #tpu.memory_space<vmem>>, vector<2x16x16xf32>
    tpu.vector_store %arg4[%c0_14, %c0_15, %c32], %7 {strides = array<i32>} : memref<2x16x64xf32, #tpu.memory_space<vmem>>, vector<2x16x16xf32>,
    %c0_16 = arith.constant 0 : index
    %c3 = arith.constant 3 : index
    %c0_17 = arith.constant 0 : index
    %c0_18 = arith.constant 0 : index
    %9 = vector.load %arg3[%c0_16, %c3, %c0_17, %c0_18] : memref<2x4x16x16xf32, #tpu.memory_space<vmem>>, vector<2x1x16x16xf32>
    %10 = vector.shape_cast %9 : vector<2x1x16x16xf32> to vector<2x16x16xf32>
    %c0_19 = arith.constant 0 : index
    %c0_20 = arith.constant 0 : index
    %c48 = arith.constant 48 : index
    %11 = vector.load %arg4[%c0_19, %c0_20, %c48] : memref<2x16x64xf32, #tpu.memory_space<vmem>>, vector<2x16x16xf32>
    tpu.vector_store %arg4[%c0_19, %c0_20, %c48], %10 {strides = array<i32>} : memref<2x16x64xf32, #tpu.memory_space<vmem>>, vector<2x16x16xf32>,
    return
  }
  func.func @transform_0(%arg0: i32, %arg1: i32, %arg2: i32) -> (i32, i32, i32, i32) {
    %c0_i32 = arith.constant 0 : i32
    %c0_i32_0 = arith.constant 0 : i32
    return %arg0, %arg1, %arg2, %c0_i32 : i32, i32, i32, i32
  }
  func.func @transform_1(%arg0: i32, %arg1: i32, %arg2: i32) -> (i32, i32, i32) {
    %c0_i32 = arith.constant 0 : i32
    return %arg0, %arg2, %arg1 : i32, i32, i32
  }
}

</mosaic_0001>

<bundles_post_ra>
// kernel: tpu_custom_call.1
= control target key start
LH: loop header
LB: loop body
LE: loop exit
PB: predicated region body
PF: predicated region fallthrough
CT: control target
= control target key end

     0   :  { %6 = vsyncpa [#allocation3], 0  ;;  %s207_s0 = inlined_call_operand.hbm [shape: f32[2,4,16,16], index: 0, kind: input, shape index: {}]   ;;  %s208_s1 = inlined_call_operand.hbm [shape: f32[2,16,64], index: 1, kind: output, shape index: {}]  }
   0x1   :  { %7 = vsyncpa [#allocation4], 0  ;;  %s178_s6 = smov [#allocation2]  }
   0x2   :  { %s13_s7 = sshll.u32 %s178_s6, 4  ;;  %s14_s7 = int_to_ptr.vmem [resolvable:$true] %s13_s7 }
   0x3   :  { %s142_s8 = scalar_lea.vmem %s14_s7, 2048  ;;  %p147_p1 = scmp.lt.s32.totalorder %s14_s7, %s14_s7 }
   0x4   :  { %p143_p0 = scmp.ne.s32.totalorder %s14_s7, %s142_s8  ;;  %p148_p2 = scmp.lt.s32.totalorder %s142_s8, %s142_s8 }
   0x6   :  { %p149_p3 = por %p148_p2, %p147_p1 }
   0x8   :  { %p150_p4 = pnand %p149_p3, %p143_p0 }
   0xa   :  { %153 = shalt.err (!%p150_p4)
}
   0xb   :  { %s179_s9 = smov 128   ;;  %s180_s10 = smov 8  }
   0xc   :  { %19 = dma.hbm_to_vmem [thread:$0]  %s207_s0, 2048, %s14_s7, [#allocation3], %s179_s9, %s179_s9, %s180_s10  }
   0xd   :  { %174 = dma.done.wait [#allocation3], 2048  }
   0xe   :  { %175 = vsyncadd [#allocation3], 4294965248  ;;  %v35_v0 = vld [vmem:[#allocation2 + $0x50] sm:$0xff]  ;;  %s181_s13 = smov 16   ;;  %v36_v2 = vld [vmem:[#allocation2 + $0x58] sm:$0xff]  ;;  %vm27_vm0 = vcmask 130048  }
   0xf   :  { %v33_v1 = vld [vmem:[#allocation2 + $0x10] sm:$0xff]  ;;  %45 = vrot.lane.b32.xlu1 %v35_v0, %s181_s13  ;;  %v34_v3 = vld [vmem:[#allocation2 + $0x18] sm:$0xff]  ;;  %v25_v4 = vld [vmem:[#allocation2 + $0x40] sm:$0xff]  ;;  %s182_s0 = smov 32   ;;  %s183_s14 = smov 48   ;;  %vm53_vm1 = vcmask 261248  }
  0x10   :  { %41 = vrot.lane.b32.xlu0 %v33_v1, %s181_s13  ;;  %v23_v5 = vld [vmem:[#allocation2] sm:$0xff]  ;;  %v26_v6 = vld [vmem:[#allocation2 + $0x48] sm:$0xff]  ;;  %30 = vst.msk [vmem:[#allocation5 + $0x10] sm:$0xff] %vm27_vm0, %v25_v4  ;;  %v86_v12 = vld [vmem:[#allocation2 + $0x38] sm:$0xff]  ;;  %vm79_vm2 = vcmask 392448   ;;  %vm105_vm3 = vcmask 523648  }
  0x11   :  { %28 = vst.msk [vmem:[#allocation5] sm:$0xff] %vm27_vm0, %v23_v5  ;;  %31 = vst.msk [vmem:[#allocation5 + $0x18] sm:$0xff] %vm27_vm0, %v26_v6  ;;  %v24_v7 = vld [vmem:[#allocation2 + $0x8] sm:$0xff]  ;;  %v59_v9 = vld [vmem:[#allocation2 + $0x20] sm:$0xff]  ;;  %s184_s15 = smov [#allocation5]  }
  0x12   :  { %v60_v8 = vld [vmem:[#allocation2 + $0x28] sm:$0xff]  ;;  %29 = vst.msk [vmem:[#allocation5 + $0x8] sm:$0xff] %vm27_vm0, %v24_v7  ;;  %v61_v11 = vld [vmem:[#allocation2 + $0x60] sm:$0xff]  ;;  %v85_v13 = vld [vmem:[#allocation2 + $0x30] sm:$0xff]  ;;  %s115_s16 = sshll.u32 %s184_s15, 4  ;;  %s116_s16 = int_to_ptr.vmem [resolvable:$true] %s115_s16 }
  0x13   :  { %47 = vrot.lane.b32.xlu1 %v36_v2, %s181_s13  ;;  %v62_v10 = vld [vmem:[#allocation2 + $0x68] sm:$0xff]  ;;  %v88_v14 = vld [vmem:[#allocation2 + $0x78] sm:$0xff]  ;;  %v87_v15 = vld [vmem:[#allocation2 + $0x70] sm:$0xff]  ;;  %s154_s17 = scalar_lea.vmem %s116_s16, 512  ;;  %p159_p6 = scmp.lt.s32.totalorder %s116_s16, %s116_s16 }
  0x14   :  { %43 = vrot.lane.b32.xlu0 %v34_v3, %s181_s13  ;;  %p155_p5 = scmp.ne.s32.totalorder %s116_s16, %s154_s17  ;;  %p160_p7 = scmp.lt.s32.totalorder %s154_s17, %s154_s17 }
  0x16   :  { %p161_p8 = por %p160_p7, %p159_p6 }
  0x17   :  { %69 = vrot.lane.b32.xlu1 %v60_v8, %s182_s0 }
  0x18   :  { %67 = vrot.lane.b32.xlu0 %v59_v9, %s182_s0  ;;  %p162_p9 = pnand %p161_p8, %p155_p5 }
  0x1b   :  { %73 = vrot.lane.b32.xlu1 %v62_v10, %s182_s0 }
  0x1c   :  { %71 = vrot.lane.b32.xlu0 %v61_v11, %s182_s0 }
  0x1f   :  { %95 = vrot.lane.b32.xlu1 %v86_v12, %s183_s14 }
  0x20   :  { %93 = vrot.lane.b32.xlu0 %v85_v13, %s183_s14 }
  0x23   :  { %99 = vrot.lane.b32.xlu1 %v88_v14, %s183_s14 }
  0x24   :  { %97 = vrot.lane.b32.xlu0 %v87_v15, %s183_s14 }
  0x81   :  { %v46_v16 = vpop.permute.xlu1 %45 }
  0x82   :  { %v42_v17 = vpop.permute.xlu0 %41  ;;  %56 = vst.msk [vmem:[#allocation5 + $0x10] sm:$0xff] %vm53_vm1, %v46_v16 }
  0x83   :  { %54 = vst.msk [vmem:[#allocation5] sm:$0xff] %vm53_vm1, %v42_v17 }
  0x85   :  { %v48_v18 = vpop.permute.xlu1 %47 }
  0x86   :  { %v44_v19 = vpop.permute.xlu0 %43  ;;  %57 = vst.msk [vmem:[#allocation5 + $0x18] sm:$0xff] %vm53_vm1, %v48_v18 }
  0x87   :  { %55 = vst.msk [vmem:[#allocation5 + $0x8] sm:$0xff] %vm53_vm1, %v44_v19 }
  0x89   :  { %v70_v20 = vpop.permute.xlu1 %69 }
  0x8a   :  { %v68_v21 = vpop.permute.xlu0 %67  ;;  %81 = vst.msk [vmem:[#allocation5 + $0x8] sm:$0xff] %vm79_vm2, %v70_v20 }
  0x8b   :  { %80 = vst.msk [vmem:[#allocation5] sm:$0xff] %vm79_vm2, %v68_v21 }
  0x8d   :  { %v74_v22 = vpop.permute.xlu1 %73 }
  0x8e   :  { %v72_v23 = vpop.permute.xlu0 %71  ;;  %83 = vst.msk [vmem:[#allocation5 + $0x18] sm:$0xff] %vm79_vm2, %v74_v22 }
  0x8f   :  { %82 = vst.msk [vmem:[#allocation5 + $0x10] sm:$0xff] %vm79_vm2, %v72_v23 }
  0x91   :  { %v96_v24 = vpop.permute.xlu1 %95 }
  0x92   :  { %v94_v25 = vpop.permute.xlu0 %93  ;;  %107 = vst.msk [vmem:[#allocation5 + $0x8] sm:$0xff] %vm105_vm3, %v96_v24 }
  0x93   :  { %106 = vst.msk [vmem:[#allocation5] sm:$0xff] %vm105_vm3, %v94_v25 }
  0x95   :  { %v100_v26 = vpop.permute.xlu1 %99 }
  0x96   :  { %v98_v27 = vpop.permute.xlu0 %97  ;;  %109 = vst.msk [vmem:[#allocation5 + $0x18] sm:$0xff] %vm105_vm3, %v100_v26 }
  0x97   :  { %108 = vst.msk [vmem:[#allocation5 + $0x10] sm:$0xff] %vm105_vm3, %v98_v27 }
  0x98   :  { %165 = shalt.err (!%p162_p9)
}
  0x99   :  { %121 = dma.vmem_to_hbm [thread:$0]  %s116_s16, 512, %s208_s1, [#allocation4], %s179_s9, %s179_s9, %s180_s10  }
  0x9a   :  { %176 = dma.done.wait [#allocation4], 512  }
  0x9b   :  { %177 = vsyncadd [#allocation4], 4294966784 }
  0x9c   :  { %125 = vsyncpa [#allocation3], 1 }
  0x9d   :  { %126 = vsyncpa [#allocation4], 1 }

</bundles_post_ra>
